<compile_context>
chip_gen: v6e
topology: v6e:2x2x1
jax: 0.10.0
libtpu: 0.0.40
codegen_flags: <defaults>
</compile_context>

<pallas_src>
import jax
import jax.numpy as jnp
from jax.experimental import pallas as pl
from jax.experimental.pallas import tpu as pltpu


def _attn_one_path(x, w, o_ref):
    """softmax(x @ w.T) @ w for one row tile; scores never leave VMEM."""
    # x @ w.T without transposing w: contract last dims of both operands (MXU).
    scores = jax.lax.dot_general(
        x, w, (((1,), (1,)), ((), ())),
        preferred_element_type=jnp.float32)                 # (tile_rows, L)

    # Numerically-stable softmax over the label axis (f32).
    m = jnp.max(scores, axis=-1, keepdims=True)
    e = jnp.exp(scores - m)                                 # EUP
    denom = jnp.sum(e, axis=-1, keepdims=True)              # XLU reduce
    probs = e * pl.reciprocal(denom, approx=False)

    # Weighted sum of label embeddings (MXU), operands back in native dtype.
    res = jnp.dot(probs.astype(w.dtype), w,
                  preferred_element_type=jnp.float32)       # (tile_rows, H)
    o_ref[...] = res.astype(o_ref.dtype)


def _fused_kernel(xi_ref, xs_ref, wi_ref, ws_ref, oi_ref, os_ref):
    _attn_one_path(xi_ref[...], wi_ref[...], oi_ref)
    _attn_one_path(xs_ref[...], ws_ref[...], os_ref)


def _single_kernel(x_ref, w_ref, o_ref):
    _attn_one_path(x_ref[...], w_ref[...], o_ref)


def _round_up(x, m):
    return ((x + m - 1) // m) * m


def _sublane(dtype):
    # 8 sublanes for 32-bit, 16 for bf16, 32 for 8-bit packed dtypes.
    return {4: 8, 2: 16, 1: 32}.get(jnp.dtype(dtype).itemsize, 8)


def _pick_tile(rows, dtype, tile_rows):
    sub = _sublane(dtype)
    tile = max(sub, min(_round_up(tile_rows, sub), _round_up(rows, sub)))
    # Prefer >= 2 grid steps so both v7x TensorCores get work under "parallel".
    if pl.cdiv(rows, tile) < 2 and rows > sub:
        tile = max(sub, _round_up(pl.cdiv(rows, 2), sub))
    return tile


def _vmem_limit(estimate_bytes):
    # Cap well under v7x's 64 MiB physical VMEM; leave compiler headroom.
    return int(min(48 << 20, max(16 << 20, 2 * estimate_bytes)))


def _label_attention_fused(xi, xs, wi, ws, tile_rows):
    """Fused intent+slot pass; xi/xs share the same leading (row) shape."""
    shape_i, shape_s = xi.shape, xs.shape
    hi, hs = shape_i[-1], shape_s[-1]
    li, ls = wi.shape[0], ws.shape[0]

    xi2 = xi.reshape(-1, hi)
    xs2 = xs.reshape(-1, hs)
    rows = xi2.shape[0]

    tile = _pick_tile(rows, xi.dtype, tile_rows)
    grid = (pl.cdiv(rows, tile),)

    itemsize = jnp.dtype(xi.dtype).itemsize
    w_itemsize = jnp.dtype(wi.dtype).itemsize
    # Working set: double-buffered in/out row tiles (both paths), label tables,
    # and the f32 score/prob intermediates.
    est = (4 * 2 * tile * max(hi, hs) * itemsize
           + 2 * (li * hi + ls * hs) * w_itemsize
           + 4 * tile * (li + ls) * 4)

    cost = pl.CostEstimate(
        flops=4 * rows * (hi * li + hs * ls),               # two matmuls / path
        transcendentals=rows * (li + ls),                   # exp
        bytes_accessed=(2 * rows * (hi + hs) + li * hi + ls * hs) * itemsize,
    )

    # TODO(synk): hidden=32 < 128 lanes -> masked vst on the output store; for
    # production keep hidden a multiple of 128 (or present a lane-dense
    # (rows*H/128, 128) output slab).
    # TODO(synk): for production label tables (L >= ~512) put
    # pipeline_mode=pl.Buffered(1) on the grid-invariant w BlockSpecs and tile
    # the label axis with an online softmax so (tile, L) fits v7x's 64 MiB VMEM.
    out_i, out_s = pl.pallas_call(
        _fused_kernel,
        out_shape=(jax.ShapeDtypeStruct((rows, hi), xi.dtype),
                   jax.ShapeDtypeStruct((rows, hs), xs.dtype)),
        grid_spec=pltpu.PrefetchScalarGridSpec(
            num_scalar_prefetch=0,
            grid=grid,
            in_specs=[
                pl.BlockSpec((tile, hi), lambda i: (i, 0)),
                pl.BlockSpec((tile, hs), lambda i: (i, 0)),
                pl.BlockSpec((li, hi), lambda i: (0, 0)),
                pl.BlockSpec((ls, hs), lambda i: (0, 0)),
            ],
            out_specs=[
                pl.BlockSpec((tile, hi), lambda i: (i, 0)),
                pl.BlockSpec((tile, hs), lambda i: (i, 0)),
            ],
        ),
        compiler_params=pltpu.CompilerParams(
            dimension_semantics=("parallel",),
            vmem_limit_bytes=_vmem_limit(est),
        ),
        cost_estimate=cost,
    )(xi2, xs2, wi, ws)

    return out_i.reshape(shape_i), out_s.reshape(shape_s)


def _label_attention_single(x, w, tile_rows):
    """Fallback when intent/slot inputs have different row counts."""
    shape = x.shape
    h = shape[-1]
    l = w.shape[0]
    x2 = x.reshape(-1, h)
    rows = x2.shape[0]

    tile = _pick_tile(rows, x.dtype, tile_rows)
    grid = (pl.cdiv(rows, tile),)

    itemsize = jnp.dtype(x.dtype).itemsize
    est = (4 * tile * h * itemsize
           + 2 * l * h * jnp.dtype(w.dtype).itemsize
           + 4 * tile * l * 4)
    cost = pl.CostEstimate(
        flops=4 * rows * h * l,
        transcendentals=rows * l,
        bytes_accessed=(2 * rows * h + l * h) * itemsize,
    )

    out = pl.pallas_call(
        _single_kernel,
        out_shape=jax.ShapeDtypeStruct((rows, h), x.dtype),
        grid_spec=pltpu.PrefetchScalarGridSpec(
            num_scalar_prefetch=0,
            grid=grid,
            in_specs=[pl.BlockSpec((tile, h), lambda i: (i, 0)),
                      pl.BlockSpec((l, h), lambda i: (0, 0))],
            out_specs=pl.BlockSpec((tile, h), lambda i: (i, 0)),
        ),
        compiler_params=pltpu.CompilerParams(
            dimension_semantics=("parallel",),
            vmem_limit_bytes=_vmem_limit(est),
        ),
        cost_estimate=cost,
    )(x2, w)
    return out.reshape(shape)


def label_attention(input_intent, input_slot, mask, w_intent_emb, w_slot_emb,
                    tile_rows=512):
    """Pallas port of Label_Attention.forward. `mask` is unused (as in PyTorch)."""
    del mask
    if input_intent.shape[:-1] == input_slot.shape[:-1]:
        return _label_attention_fused(input_intent, input_slot,
                                      w_intent_emb, w_slot_emb, tile_rows)
    # Different row counts: run each path through its own (still fused
    # matmul->softmax->matmul) kernel.
    return (_label_attention_single(input_intent, w_intent_emb, tile_rows),
            _label_attention_single(input_slot, w_slot_emb, tile_rows))


if __name__ == "__main__":
    key = jax.random.PRNGKey(0)
    k1, k2, k3, k4 = jax.random.split(key, 4)

    batch, seq, hidden = 2, 8, 32
    num_intents, num_slots = 16, 24

    input_intent = jax.random.normal(k1, (batch, seq, hidden), dtype=jnp.float32)
    input_slot = jax.random.normal(k2, (batch, seq, hidden), dtype=jnp.float32)
    w_intent = jax.random.normal(k3, (num_intents, hidden), dtype=jnp.float32)
    w_slot = jax.random.normal(k4, (num_slots, hidden), dtype=jnp.float32)
    mask = jnp.ones((batch, seq), dtype=jnp.float32)   # unused, matches spec

    intent_res, slot_res = label_attention(input_intent, input_slot, mask,
                                           w_intent, w_slot)
    intent_res = jax.block_until_ready(intent_res)
    slot_res = jax.block_until_ready(slot_res)

    # Plain-JAX reference (mirrors the PyTorch forward)
    def ref(x, w):
        scores = jnp.matmul(x, w.T)
        probs = jax.nn.softmax(scores, axis=-1)
        return jnp.matmul(probs, w)

    ref_intent = ref(input_intent, w_intent)
    ref_slot = ref(input_slot, w_slot)

    assert intent_res.shape == (batch, seq, hidden)
    assert slot_res.shape == (batch, seq, hidden)
    assert jnp.allclose(intent_res, ref_intent, atol=1e-5, rtol=1e-5), "intent mismatch"
    assert jnp.allclose(slot_res, ref_slot, atol=1e-5, rtol=1e-5), "slot mismatch"

    print("KERNEL_OK")
</pallas_src>

<mosaic_0001>
module attributes {stable_mosaic.version = 11 : i64} {
  func.func @_fused_kernel(%arg0: i32, %arg1: memref<8x32xf32, #tpu.memory_space<vmem>>, %arg2: memref<8x32xf32, #tpu.memory_space<vmem>>, %arg3: memref<16x32xf32, #tpu.memory_space<vmem>>, %arg4: memref<24x32xf32, #tpu.memory_space<vmem>>, %arg5: memref<8x32xf32, #tpu.memory_space<vmem>>, %arg6: memref<8x32xf32, #tpu.memory_space<vmem>>) attributes {dimension_semantics = [#tpu.dimension_semantics<parallel>], iteration_bounds = array<i64: 2>, scalar_prefetch = 0 : i64, scratch_operands = 0 : i64, tpu.core_type = #tpu.core_type<tc>, window_params = [{transform_indices = @transform_0, window_bounds = array<i64: 8, 32>}, {transform_indices = @transform_1, window_bounds = array<i64: 8, 32>}, {pipeline_mode = #tpu.pipeline_mode<synchronous>, transform_indices = @transform_2, window_bounds = array<i64: 16, 32>}, {pipeline_mode = #tpu.pipeline_mode<synchronous>, transform_indices = @transform_3, window_bounds = array<i64: 24, 32>}, {transform_indices = @transform_4, window_bounds = array<i64: 8, 32>}, {transform_indices = @transform_5, window_bounds = array<i64: 8, 32>}]} {
    %c0 = arith.constant 0 : index
    %c0_0 = arith.constant 0 : index
    %0 = vector.load %arg1[%c0, %c0_0] : memref<8x32xf32, #tpu.memory_space<vmem>>, vector<8x32xf32>
    %c0_1 = arith.constant 0 : index
    %c0_2 = arith.constant 0 : index
    %1 = vector.load %arg3[%c0_1, %c0_2] : memref<16x32xf32, #tpu.memory_space<vmem>>, vector<16x32xf32>
    %cst = arith.constant dense<0.000000e+00> : vector<8x16xf32>
    %2 = tpu.matmul %0, %1, %cst {dimension_numbers = #tpu.dot_dimension_numbers<[1], [1], [0], [0], [0, 0, 1, 0], [], []>} : vector<8x32xf32>, vector<16x32xf32>, vector<8x16xf32> -> vector<8x16xf32>
    %cst_3 = arith.constant dense<0xFF800000> : vector<8xf32>
    %3 = vector.multi_reduction <maximumf>, %2, %cst_3 [1] : vector<8x16xf32> to vector<8xf32>
    %4 = vector.shape_cast %3 : vector<8xf32> to vector<8x1xf32>
    %5 = vector.broadcast %4 : vector<8x1xf32> to vector<8x16xf32>
    %6 = arith.subf %2, %5 : vector<8x16xf32>
    %7 = math.exp %6 : vector<8x16xf32>
    %cst_4 = arith.constant dense<0.000000e+00> : vector<8xf32>
    %8 = vector.multi_reduction <add>, %7, %cst_4 [1] : vector<8x16xf32> to vector<8xf32>
    %9 = vector.shape_cast %8 : vector<8xf32> to vector<8x1xf32>
    %10 = tpu.reciprocal %9 : vector<8x1xf32> -> vector<8x1xf32>
    %11 = vector.broadcast %10 : vector<8x1xf32> to vector<8x16xf32>
    %12 = arith.mulf %7, %11 : vector<8x16xf32>
    %cst_5 = arith.constant dense<0.000000e+00> : vector<8x32xf32>
    %13 = tpu.matmul %12, %1, %cst_5 {dimension_numbers = #tpu.dot_dimension_numbers<[1], [0], [0], [1], [0, 0, 1, 1], [], []>} : vector<8x16xf32>, vector<16x32xf32>, vector<8x32xf32> -> vector<8x32xf32>
    %c0_6 = arith.constant 0 : index
    %c0_7 = arith.constant 0 : index
    %14 = vector.load %arg5[%c0_6, %c0_7] : memref<8x32xf32, #tpu.memory_space<vmem>>, vector<8x32xf32>
    tpu.vector_store %arg5[%c0_6, %c0_7], %13 {strides = array<i32>} : memref<8x32xf32, #tpu.memory_space<vmem>>, vector<8x32xf32>,
    %c0_8 = arith.constant 0 : index
    %c0_9 = arith.constant 0 : index
    %15 = vector.load %arg2[%c0_8, %c0_9] : memref<8x32xf32, #tpu.memory_space<vmem>>, vector<8x32xf32>
    %c0_10 = arith.constant 0 : index
    %c0_11 = arith.constant 0 : index
    %16 = vector.load %arg4[%c0_10, %c0_11] : memref<24x32xf32, #tpu.memory_space<vmem>>, vector<24x32xf32>
    %cst_12 = arith.constant dense<0.000000e+00> : vector<8x24xf32>
    %17 = tpu.matmul %15, %16, %cst_12 {dimension_numbers = #tpu.dot_dimension_numbers<[1], [1], [0], [0], [0, 0, 1, 0], [], []>} : vector<8x32xf32>, vector<24x32xf32>, vector<8x24xf32> -> vector<8x24xf32>
    %cst_13 = arith.constant dense<0xFF800000> : vector<8xf32>
    %18 = vector.multi_reduction <maximumf>, %17, %cst_13 [1] : vector<8x24xf32> to vector<8xf32>
    %19 = vector.shape_cast %18 : vector<8xf32> to vector<8x1xf32>
    %20 = vector.broadcast %19 : vector<8x1xf32> to vector<8x24xf32>
    %21 = arith.subf %17, %20 : vector<8x24xf32>
    %22 = math.exp %21 : vector<8x24xf32>
    %cst_14 = arith.constant dense<0.000000e+00> : vector<8xf32>
    %23 = vector.multi_reduction <add>, %22, %cst_14 [1] : vector<8x24xf32> to vector<8xf32>
    %24 = vector.shape_cast %23 : vector<8xf32> to vector<8x1xf32>
    %25 = tpu.reciprocal %24 : vector<8x1xf32> -> vector<8x1xf32>
    %26 = vector.broadcast %25 : vector<8x1xf32> to vector<8x24xf32>
    %27 = arith.mulf %22, %26 : vector<8x24xf32>
    %cst_15 = arith.constant dense<0.000000e+00> : vector<8x32xf32>
    %28 = tpu.matmul %27, %16, %cst_15 {dimension_numbers = #tpu.dot_dimension_numbers<[1], [0], [0], [1], [0, 0, 1, 1], [], []>} : vector<8x24xf32>, vector<24x32xf32>, vector<8x32xf32> -> vector<8x32xf32>
    %c0_16 = arith.constant 0 : index
    %c0_17 = arith.constant 0 : index
    %29 = vector.load %arg6[%c0_16, %c0_17] : memref<8x32xf32, #tpu.memory_space<vmem>>, vector<8x32xf32>
    tpu.vector_store %arg6[%c0_16, %c0_17], %28 {strides = array<i32>} : memref<8x32xf32, #tpu.memory_space<vmem>>, vector<8x32xf32>,
    return
  }
  func.func @transform_0(%arg0: i32) -> (i32, i32) {
    %c0_i32 = arith.constant 0 : i32
    %c0_i32_0 = arith.constant 0 : i32
    return %arg0, %c0_i32 : i32, i32
  }
  func.func @transform_1(%arg0: i32) -> (i32, i32) {
    %c0_i32 = arith.constant 0 : i32
    %c0_i32_0 = arith.constant 0 : i32
    return %arg0, %c0_i32 : i32, i32
  }
  func.func @transform_2(%arg0: i32) -> (i32, i32) {
    %c0_i32 = arith.constant 0 : i32
    %c0_i32_0 = arith.constant 0 : i32
    %c0_i32_1 = arith.constant 0 : i32
    return %c0_i32, %c0_i32_0 : i32, i32
  }
  func.func @transform_3(%arg0: i32) -> (i32, i32) {
    %c0_i32 = arith.constant 0 : i32
    %c0_i32_0 = arith.constant 0 : i32
    %c0_i32_1 = arith.constant 0 : i32
    return %c0_i32, %c0_i32_0 : i32, i32
  }
  func.func @transform_4(%arg0: i32) -> (i32, i32) {
    %c0_i32 = arith.constant 0 : i32
    %c0_i32_0 = arith.constant 0 : i32
    return %arg0, %c0_i32 : i32, i32
  }
  func.func @transform_5(%arg0: i32) -> (i32, i32) {
    %c0_i32 = arith.constant 0 : i32
    %c0_i32_0 = arith.constant 0 : i32
    return %arg0, %c0_i32 : i32, i32
  }
}

</mosaic_0001>

<bundles_post_ra>
// kernel: tpu_custom_call.1
= control target key start
LH: loop header
LB: loop body
LE: loop exit
PB: predicated region body
PF: predicated region fallthrough
CT: control target
= control target key end

     0   :  { %s1531_s0 = inlined_call_operand.hbm [shape: f32[16,32], index: 0, kind: input, shape index: {}]   ;;  %s1532_s1 = inlined_call_operand.hbm [shape: f32[16,32], index: 1, kind: input, shape index: {}]   ;;  %s1533_s2 = inlined_call_operand.hbm [shape: f32[16,32], index: 2, kind: input, shape index: {}]   ;;  %s1534_s3 = inlined_call_operand.hbm [shape: f32[24,32], index: 3, kind: input, shape index: {}]   ;;  %s1535_s4 = inlined_call_operand.hbm [shape: f32[16,32], index: 4, kind: output, shape index: {0}]   ;;  %s1536_s5 = inlined_call_operand.hbm [shape: f32[16,32], index: 5, kind: output, shape index: {1}]  }
   0x1   :  { %1541 = sst [smem:[#allocation19_spill]] %s1533_s2 }
   0x2   :  { %1542 = sst [smem:[#allocation20_spill]] %s1534_s3 }
   0x3   :  { %11 = vsyncpa [#allocation3], 0 }
   0x4   :  { %13 = vsyncpa [#allocation3 + $0x1], 0 }
   0x5   :  { %14 = vsyncpa [#allocation6], 0 }
   0x6   :  { %16 = vsyncpa [#allocation6 + $0x1], 0 }
   0x7   :  { %17 = vsyncpa [#allocation9], 0 }
   0x8   :  { %18 = vsyncpa [#allocation4], 0 }
   0x9   :  { %20 = vsyncpa [#allocation4 + $0x1], 0 }
   0xa   :  { %21 = vsyncpa [#allocation12], 0 }
   0xb   :  { %23 = vsyncpa [#allocation12 + $0x1], 0  ;;  %s1256_s18 = smov 0   ;;  %s1258_s19 = smov 0  }
   0xc   :  { %s1260_s20 = smov 0   ;;  %s1262_s21 = smov 0  }
   0xd LB: > { %s1277_s22 = sadd.s32 4294967295, %s1214_s21   ;;  %s834_s23 = sadd.s32 4294967294, %s1214_s21   ;;  %s1214_s21 = sphi %s1262_s21, %s1564_s21   ;;  %s1210_s20 = sphi %s1260_s20, %s1563_s20   ;;  %s1206_s19 = sphi %s1258_s19, %s1562_s19   ;;  %s1202_s18 = sphi %s1256_s18, %s1561_s18  }
   0xe   : > { %p49_p0 = scmp.ne.s32.totalorder %s1206_s19, %s1202_s18  ;;  %p1537_p1 = scmp.eq.s32.totalorder %s1277_s22, 0 }
   0xf   : > { %p147_p3 = scmp.eq.s32.totalorder %s834_s23, 1  ;;  %p835_p5 = scmp.ge.s32.totalorder %s1214_s21, 1 }
  0x10   : > { %p1286_p4 = por %p1537_p1, %p49_p0  ;;  %p180_p7 = scmp.lt.s32.totalorder %s1214_s21, 3 }
  0x11   : > { %p1291_p6 = por %p147_p3, %p49_p0  ;;  %s1216_s27 = smov [#allocation7]  }
  0x12   : > { %s1543_s24 = scalar_select %p1286_p4, 1, 0 }
  0x13   : > { %s1544_s25 = scalar_select %p1291_p6, 1, 0 }
  0x14   : > { %p1296_p8 = pnand %p835_p5, %p180_p7  ;;  %s192_s28 = sshll.u32 %s1216_s27, 4  ;;  %s193_s28 = int_to_ptr.vmem [resolvable:$true] %s192_s28 }
  0x15   : > { %s1217_s30 = smov [#allocation8]   ;;  %s1011_s7 = scalar_lea.vmem %s193_s28, 256 }
  0x16   : > { %s1545_s26 = scalar_select %p1296_p8, 1, 0 }
  0x17   : > { %p927_p9 = pneg %p1296_p8  ;;  %s205_s6 = sshll.u32 %s1217_s30, 4  ;;  %s206_s6 = int_to_ptr.vmem [resolvable:$true] %s205_s6 }
  0x18   : > { %p1012_p13 = scmp.ne.s32.totalorder %s193_s28, %s1011_s7  ;;  %p1019_p5 = scmp.lt.s32.totalorder %s193_s28, %s193_s28 }
  0x19   : > { %p1305_p11 = pnand %p927_p9, %p1537_p1  ;;  %p1020_p7 = scmp.lt.s32.totalorder %s1011_s7, %s1011_s7 }
  0x1b   : > { %p1002_p12 = pneg %p1305_p11  ;;  %p1021_p10 = por %p1020_p7, %p1019_p5 }
  0x1d   : > { %p1014_p0 = pnand %p1012_p13, %p1002_p12 }
  0x1f   : > { %p1015_p3 = pneg %p1014_p0 }
  0x21   : > { %p1022_p9 = pnand %p1021_p10, %p1015_p3 }
  0x23   : > { %1025 = shalt.err (!%p1022_p9)
}
  0x24   : > { %s1218_s8 = smov 128   ;;  %s1219_s9 = smov 8  }
  0x25   : > { %s1547_s2 = sld [smem:[#allocation19_spill]]  ;;  %s1037_s12 = scalar_lea.vmem %s206_s6, 384 }
  0x26   : > { %p1038_p1 = scmp.ne.s32.totalorder %s206_s6, %s1037_s12  ;;  %p1045_p2 = scmp.lt.s32.totalorder %s206_s6, %s206_s6 }
  0x27   : > { %p1046_p6 = scmp.lt.s32.totalorder %s1037_s12, %s1037_s12 }
  0x28   : > { %p1040_p13 = pnand %p1038_p1, %p1002_p12 }
  0x29   : > { %p1047_p5 = por %p1046_p6, %p1045_p2 }
  0x2a   : > { %p1041_p0 = pneg %p1040_p13 }
  0x2b   : > { %930 = dma.hbm_to_vmem [thread:$0]  (!%p1305_p11), %s1547_s2, 256, %s193_s28, [#allocation6], %s1218_s8, %s1218_s8, %s1219_s9  }
  0x2c   : > { %p1048_p10 = pnand %p1047_p5, %p1041_p0 }
  0x2e   : > { %1051 = shalt.err (!%p1048_p10)
}
  0x2f   : > { %s1548_s3 = sld [smem:[#allocation20_spill]]  ;;  %s1328_s15 = sadd.s32 1, %s1214_s21  }
  0x30   : > { %s36_s16 = sadd.s32 1, %s1210_s20  ;;  %s33_s17 = ssub.s32 %s1214_s21, %s1328_s15 }
  0x31   : > { %p43_p1 = scmp.ne.s32.totalorder %s1210_s20, %s1206_s19  ;;  %p34_p2 = scmp.eq.s32.totalorder %s33_s17, 0 }
  0x32   : > { %p44_p6 = scmp.eq.s32.totalorder %s1214_s21, 0  ;;  %p1549_p12 = scmp.eq.s32.totalorder %s1277_s22, 1 }
  0x33   : > { %p950_p7 = scmp.lt.s32.totalorder %s1214_s21, 2  ;;  %s219_s28 = sand.u32 1, %s1210_s20  }
  0x34   : > { %p1338_p3 = por %p1549_p12, %p43_p1  ;;  %p45_p9 = por %p44_p6, %p43_p1 }
  0x35   : > { %933 = dma.hbm_to_vmem [thread:$0]  (!%p1305_p11), %s1548_s3, 384, %s206_s6, [#allocation9], %s1218_s8, %s1218_s8, %s1219_s9  }
  0x36   : > { %s1550_s23 = scalar_select %p1338_p3, 1, 0 }
  0x37   : > { %s1344_s27 = scalar_select %p34_p2, %s1210_s20, %s36_s16  }
  0x38   : > { %s1347_s29 = sshll.u32 %s219_s28, 3  ;;  %s840_s30 = sshll.u32 %s1214_s21, 7 }
  0x39   : > { %s1353_s8 = scalar_lea.hbm %s1531_s0, %s840_s30  ;;  %s223_s9 = scalar_lea.vmem [#allocation2], %s1347_s29 }
  0x3a   : > { %s230_s10 = sshll.u32 %s223_s9, 4  ;;  %p1358_p11 = pnand %p950_p7, %p45_p9  ;;  %s1356_s10 = int_to_ptr.vmem [resolvable:$true] %s230_s10 }
  0x3b   : > { %s1365_s14 = scalar_lea.hbm %s1532_s1, %s840_s30  ;;  %s237_s16 = sand.u32 1, %s1214_s21  }
  0x3c   : > { %s220_s17 = scalar_lea.sflag [#allocation3], %s219_s28  ;;  %s1052_s6 = scalar_lea.hbm %s1353_s8, 128 }
  0x3d   : > { %p1053_p13 = scmp.ne.s32.totalorder %s1353_s8, %s1052_s6  ;;  %p1054_p0 = pneg %p1358_p11 }
  0x3e   : > { %s1057_s2 = scalar_lea.hbm %s1531_s0, 256  ;;  %p1058_p1 = scmp.lt.s32.totalorder %s1353_s8, %s1531_s0 }
  0x3f   : > { %p1055_p5 = pnand %p1054_p0, %p1053_p13  ;;  %p1059_p2 = scmp.lt.s32.totalorder %s1057_s2, %s1052_s6 }
  0x41   : > { %p1056_p10 = pneg %p1055_p5  ;;  %p1060_p6 = por %p1059_p2, %p1058_p1 }
  0x43   : > { %p1061_p12 = pnand %p1060_p6, %p1056_p10 }
  0x45   : > { %1064 = shalt.err (!%p1061_p12)
}
  0x46   : > { %s1065_s28 = scalar_lea.vmem %s1356_s10, 128  ;;  %s1220_s30 = smov [#allocation2]  }
  0x47   : > { %p1066_p7 = scmp.ne.s32.totalorder %s1356_s10, %s1065_s28  ;;  %s1070_s13 = sshll.u32 %s1220_s30, 4  ;;  %s1071_s13 = int_to_ptr.vmem [resolvable:$false] %s1070_s13 }
  0x48   : > { %s1072_s7 = scalar_lea.vmem %s1071_s13, 256  ;;  %p1073_p5 = scmp.lt.s32.totalorder %s1356_s10, %s1071_s13 }
  0x49   : > { %p1068_p9 = pnand %p1066_p7, %p1054_p0  ;;  %p1074_p3 = scmp.lt.s32.totalorder %s1072_s7, %s1065_s28 }
  0x4b   : > { %p1069_p13 = pneg %p1068_p9  ;;  %p1075_p4 = por %p1074_p3, %p1073_p5 }
  0x4d   : > { %p1076_p1 = pnand %p1075_p4, %p1069_p13 }
  0x4f   : > { %1079 = shalt.err (!%p1076_p1)
}
  0x50   : > { %937 = dma.hbm_to_vmem [thread:$0]  (!%p1358_p11), %s1353_s8, 128, %s1356_s10, %s220_s17  }
  0x51   : > { %s241_s2 = scalar_lea.vmem [#allocation5], %s1347_s29  ;;  %s238_s6 = scalar_lea.sflag [#allocation6], %s237_s16 }
  0x52   : > { %s248_s3 = sshll.u32 %s241_s2, 4  ;;  %s1080_s9 = scalar_lea.hbm %s1365_s14, 128  ;;  %s249_s3 = int_to_ptr.vmem [resolvable:$true] %s248_s3 }
  0x53   : > { %p1081_p3 = scmp.ne.s32.totalorder %s1365_s14, %s1080_s9  ;;  %s1085_s30 = scalar_lea.hbm %s1532_s1, 256 }
  0x54   : > { %p1086_p2 = scmp.lt.s32.totalorder %s1365_s14, %s1532_s1  ;;  %p1087_p6 = scmp.lt.s32.totalorder %s1085_s30, %s1080_s9 }
  0x55   : > { %p1083_p4 = pnand %p1081_p3, %p1054_p0 }
  0x56   : > { %p1088_p12 = por %p1087_p6, %p1086_p2 }
  0x57   : > { %p1084_p10 = pneg %p1083_p4 }
  0x59   : > { %p1089_p7 = pnand %p1088_p12, %p1084_p10 }
  0x5b   : > { %1092 = shalt.err (!%p1089_p7)
}
  0x5c   : > { %s1093_s29 = scalar_lea.vmem %s249_s3, 128  ;;  %s1221_s8 = smov [#allocation5]  }
  0x5d   : > { %p1094_p9 = scmp.ne.s32.totalorder %s249_s3, %s1093_s29  ;;  %s1098_s10 = sshll.u32 %s1221_s8, 4  ;;  %s1099_s10 = int_to_ptr.vmem [resolvable:$false] %s1098_s10 }
  0x5e   : > { %s1100_s16 = scalar_lea.vmem %s1099_s10, 256  ;;  %p1101_p1 = scmp.lt.s32.totalorder %s249_s3, %s1099_s10 }
  0x5f   : > { %p1096_p13 = pnand %p1094_p9, %p1054_p0  ;;  %p1102_p3 = scmp.lt.s32.totalorder %s1100_s16, %s1093_s29 }
  0x61   : > { %p1097_p5 = pneg %p1096_p13  ;;  %p1103_p4 = por %p1102_p3, %p1101_p1 }
  0x63   : > { %p1104_p8 = pnand %p1103_p4, %p1097_p5 }
  0x65   : > { %1107 = shalt.err (!%p1104_p8)
}
  0x66   : > { %940 = dma.hbm_to_vmem [thread:$0]  (!%p1358_p11), %s1365_s14, 128, %s249_s3, %s238_s6  }
  0x67   : > { %p1552_p10 = scmp.ne.s32.totalorder %s1545_s26, 0 }
  0x68   : > { %s1416_s17 = sand.u32 (!%p1552_p10), 1, %s1206_s19   ;;  %p1553_p0 = scmp.ne.s32.totalorder (!%p1552_p10), %s1543_s24, 0 }
  0x69   : > { %257 = sbr.rel (%p1552_p10) target bundleno = 1359 (0x54f), region = 36  ;;  %s1419_s2 = sshll.u32 (!%p1552_p10), %s1416_s17, 3 }
  0x6a   : > { %s260_s9 = scalar_lea.sflag (!%p1552_p10), [#allocation3], %s1416_s17  ;;  %s263_s12 = scalar_lea.vmem (!%p1552_p10), [#allocation2], %s1419_s2 }
  0x6e   : > { %1177 = dma.done.wait (%p1553_p0), %s260_s9, 128  }
  0x6f   : > { %1179 = vsyncadd (%p1553_p0), %s260_s9, 4294967168  ;;  %s268_s26 = sand.u32 1, %s1277_s22   ;;  %s272_s14 = scalar_lea.vmem [#allocation5], %s1419_s2 }
  0x70   : > { %s269_s11 = scalar_lea.sflag [#allocation6], %s268_s26 }
  0x71   : > { %1181 = dma.done.wait (%p1553_p0), %s269_s11, 128  }
  0x72   : > { %1183 = vsyncadd (%p1553_p0), %s269_s11, 4294967168  ;;  %p1554_p8 = scmp.eq.s32.totalorder %s1277_s22, 0 }
  0x74   : > { %1185 = dma.done.wait (%p1554_p8), [#allocation6], 256   ;;  %p1555_p11 = pmov %p1554_p8 }
  0x75   : > { %p1556_p2 = pmov %p1554_p8 }
  0x76   : > { %1187 = vsyncadd (%p1555_p11), [#allocation6], 4294967040 }
  0x77   : > { %1189 = dma.done.wait (%p1556_p2), [#allocation9], 384   ;;  %p1557_p6 = pmov %p1556_p2 }
  0x78   : > { %v1222_v0 = vmov 0.0   ;;  %vm1223_vm0 = vmmov 0   ;;  %vm320_vm1 = vcmask 261120   ;;  %v319_v1 = vld [vmem:[#allocation7 + $0x8] sm:$0xff]  ;;  %v318_v2 = vld [vmem:[#allocation7] sm:$0xff]  ;;  %vm400_vm2 = vcmask 130048  }
  0x79   : > { %1191 = vsyncadd (%p1557_p6), [#allocation9], 4294966912  ;;  %879 = vmatprep.subr.mxu0 %v1222_v0  ;;  %883 = vmatprep.mubr.msk.f32.mxu0 %vm1223_vm0, %v1222_v0  ;;  %v317_v3 = vld [vmem:[%s263_s12] sm:$0xff]  ;;  %v488_v13 = vld [vmem:[#allocation8 + $0x8] sm:$0xff]  ;;  %s309_s24 = scalar_lea.vmem [#allocation10], %s1419_s2  ;;  %vm572_vm3 = vcmask 195584  }
  0x7a   : > { %886 = vmatprep.subr.mxu1 %v1222_v0  ;;  %890 = vmatprep.mubr.msk.f32.mxu1 %vm1223_vm0, %v1222_v0  ;;  %v489_v12 = vld [vmem:[#allocation8 + $0x10] sm:$0xff]  ;;  %v487_v14 = vld [vmem:[#allocation8] sm:$0xff]  ;;  %s861_s3 = sshll.u32 %s1277_s22, 7  ;;  %s677_s6 = sshll.u32 %s309_s24, 4  ;;  %s678_s6 = int_to_ptr.vmem [resolvable:$true] %s677_s6 }
  0x7b   : > { %880 = vmatpush3.xpose.msk.msra.mxu0 %vm320_vm1, %v319_v1  ;;  %887 = vmatpush3.msra.mxu1 %v319_v1  ;;  %v486_v18 = vld [vmem:[%s272_s14] sm:$0xff]  ;;  %s675_s13 = scalar_lea.hbm %s1535_s4, %s861_s3  ;;  %s659_s7 = scalar_lea.sflag [#allocation4], %s1416_s17 }
  0x7c   : > { %881 = vmatprep.subr.mxu0 %v1222_v0  ;;  %888 = vmatprep.subr.mxu1 %v1222_v0  ;;  %s1108_s29 = scalar_lea.vmem %s678_s6, 128  ;;  %p1558_p7 = scmp.ne.s32.totalorder %s1550_s23, 0 }
  0x7d   : > { %889 = vmatpush3.msra.mxu1 %v318_v2  ;;  %p1109_p12 = scmp.ne.s32.totalorder %s678_s6, %s1108_s29  ;;  %s1224_s8 = smov [#allocation10]  }
  0x7e   : > { %893 = vmatprep.subr.mxu1 %v1222_v0  ;;  %s1112_s10 = sshll.u32 %s1224_s8, 4  ;;  %s1113_s10 = int_to_ptr.vmem [resolvable:$false] %s1112_s10 }
  0x7f   : > { %882 = vmatpush3.xpose.msk.msra.mxu0 %vm320_vm1, %v318_v2  ;;  %p1110_p9 = pnand %p1109_p12, %p1558_p7  ;;  %s1114_s16 = scalar_lea.vmem %s1113_s10, 256 }
  0x80   : > { %902 = vmatprep.subr.mxu0 %v1222_v0  ;;  %p1115_p5 = scmp.lt.s32.totalorder %s678_s6, %s1113_s10  ;;  %p1116_p1 = scmp.lt.s32.totalorder %s1114_s16, %s1108_s29 }
  0x81   : > { %p1111_p13 = pneg %p1110_p9 }
  0x82   : > { %884 = vmatmul.mubr.msk.f32.vlgmr.msra.gmra.mxu0 %vm320_vm1, %v317_v3  ;;  %p1117_p3 = por %p1116_p1, %p1115_p5 }
  0x83   : > { %908 = vmatprep.mubr.msk.f32.mxu0 %vm1223_vm0, %v1222_v0  ;;  %903 = vmatpush3.msra.mxu0 %v489_v12 }
  0x84   : > { %904 = vmatprep.subr.mxu0 %v1222_v0  ;;  %p1118_p4 = pnand %p1117_p3, %p1111_p13 }
  0x85   : > { %905 = vmatpush3.msra.mxu0 %v488_v13 }
  0x86   : > { %906 = vmatprep.subr.mxu0 %v1222_v0 }
  0x87   : > { %907 = vmatpush3.msra.mxu0 %v487_v14 }
 0x142   : > { %v396_v4 = vpop.f32.mrf.mxu0 }
 0x143   : > { %v401_v5 = vsel %vm400_vm2, %v396_v4, -inf }
 0x144   : > { %402 = vmax.xlane.f32.xlu0 %v401_v5  ;;  %v885_v6 = vpop.f32.mrf.mxu0 }
 0x1cd   : > { %v403_v7 = vpop.xlane.xlu0 %402 }
 0x1ce   : > { %v404_v8 = vsub.f32 %v396_v4, %v403_v7 }
 0x1d0   : > { %v405_v9 = vmul.f32 1.442695, %v404_v8 }
 0x1d2   : > { %992 = vpow2.f32 %v405_v9 }
 0x1df   : > { %v993_v10 = vpop.eup %992 }
 0x1e0   : > { %v407_v11 = vsel %vm400_vm2, %v993_v10, 0.0 }
 0x1e1   : > { %408 = vadd.xlane.f32.xlu0 %v407_v11 }
 0x26a   : > { %v409_v15 = vpop.xlane.xlu0 %408 }
 0x26b   : > { %994 = vrcp.f32 %v409_v15 }
 0x278   : > { %v995_v16 = vpop.eup %994 }
 0x279   : > { %v411_v17 = vmul.f32 %v995_v16, %v993_v10 }
 0x27b   : > { %891 = vmatmul.mubr.msk.f32.vlgmr.msra.gmra.mxu1 %vm400_vm2, %v411_v17 }
 0x27c   : > { %894 = vmatpush3.xpose.msk.msra.mxu1 %vm320_vm1, %v489_v12  ;;  %899 = vmatprep.mubr.msk.f32.mxu1 %vm1223_vm0, %v1222_v0 }
 0x27d   : > { %895 = vmatprep.subr.mxu1 %v1222_v0 }
 0x280   : > { %896 = vmatpush3.xpose.msk.msra.mxu1 %vm320_vm1, %v488_v13 }
 0x281   : > { %897 = vmatprep.subr.mxu1 %v1222_v0 }
 0x284   : > { %898 = vmatpush3.xpose.msk.msra.mxu1 %vm320_vm1, %v487_v14 }
 0x287   : > { %900 = vmatmul.mubr.msk.f32.vlgmr.msra.gmra.mxu1 %vm320_vm1, %v486_v18 }
 0x33b   : > { %v481_v19 = vpop.f32.mrf.mxu1 }
 0x33c   : > { %485 = vst.msk [vmem:[%s309_s24] sm:$0xff] %vm320_vm1, %v481_v19 }
 0x33d   : > { %v892_v20 = vpop.f32.mrf.mxu1 }
 0x347   : > { %v568_v21 = vpop.f32.mrf.mxu1 }
 0x348   : > { %v573_v22 = vsel %vm572_vm3, %v568_v21, -inf }
 0x349   : > { %574 = vmax.xlane.f32.xlu1 %v573_v22  ;;  %v901_v23 = vpop.f32.mrf.mxu1 }
 0x3d2   : > { %v575_v24 = vpop.xlane.xlu1 %574 }
 0x3d3   : > { %v576_v25 = vsub.f32 %v568_v21, %v575_v24 }
 0x3d5   : > { %v577_v26 = vmul.f32 1.442695, %v576_v25 }
 0x3d7   : > { %996 = vpow2.f32 %v577_v26 }
 0x3e4   : > { %v997_v27 = vpop.eup %996 }
 0x3e5   : > { %v579_v28 = vsel %vm572_vm3, %v997_v27, 0.0 }
 0x3e6   : > { %580 = vadd.xlane.f32.xlu1 %v579_v28 }
 0x46f   : > { %v581_v29 = vpop.xlane.xlu1 %580 }
 0x470   : > { %998 = vrcp.f32 %v581_v29 }
 0x47d   : > { %v999_v30 = vpop.eup %998 }
 0x47e   : > { %v583_v31 = vmul.f32 %v999_v30, %v997_v27 }
 0x480   : > { %909 = vmatmul.mubr.msk.f32.vlgmr.msra.gmra.mxu0 %vm572_vm3, %v583_v31 }
 0x481   : > { %1121 = shalt.err (!%p1118_p4)
}
 0x482   : > { %s1122_s9 = scalar_lea.hbm %s675_s13, 128  ;;  %s1126_s11 = scalar_lea.hbm %s1535_s4, 256 }
 0x483   : > { %p1123_p10 = scmp.ne.s32.totalorder %s675_s13, %s1122_s9  ;;  %p1127_p11 = scmp.lt.s32.totalorder %s675_s13, %s1535_s4 }
 0x484   : > { %p1128_p2 = scmp.lt.s32.totalorder %s1126_s11, %s1122_s9 }
 0x485   : > { %p1124_p0 = pnand %p1123_p10, %p1558_p7 }
 0x486   : > { %p1129_p6 = por %p1128_p2, %p1127_p11 }
 0x487   : > { %p1125_p8 = pneg %p1124_p0 }
 0x489   : > { %p1130_p12 = pnand %p1129_p6, %p1125_p8 }
 0x48b   : > { %1133 = shalt.err (!%p1130_p12)
}
 0x48c   : > { %923 = dma.vmem_to_hbm [thread:$0]  (%p1558_p7), %s678_s6, 128, %s675_s13, %s659_s7  }
 0x48d   : > { %s316_s28 = scalar_lea.vmem [#allocation11], %s1419_s2  ;;  %s1487_s10 = scalar_lea.hbm %s1536_s5, %s861_s3 }
 0x48e   : > { %s690_s30 = sshll.u32 %s316_s28, 4  ;;  %s664_s16 = scalar_lea.sflag [#allocation12], %s1416_s17  ;;  %s1489_s30 = int_to_ptr.vmem [resolvable:$true] %s690_s30 }
 0x48f   : > { %s1134_s9 = scalar_lea.vmem %s1489_s30, 128  ;;  %s1225_s22 = smov [#allocation11]  }
 0x490   : > { %p1135_p9 = scmp.ne.s32.totalorder %s1489_s30, %s1134_s9  ;;  %s1138_s2 = sshll.u32 %s1225_s22, 4  ;;  %s1139_s2 = int_to_ptr.vmem [resolvable:$false] %s1138_s2 }
 0x491   : > { %s1140_s3 = scalar_lea.vmem %s1139_s2, 256  ;;  %p1141_p1 = scmp.lt.s32.totalorder %s1489_s30, %s1139_s2 }
 0x492   : > { %p1136_p13 = pnand %p1135_p9, %p1558_p7  ;;  %p1142_p3 = scmp.lt.s32.totalorder %s1140_s3, %s1134_s9 }
 0x494   : > { %p1137_p5 = pneg %p1136_p13  ;;  %p1143_p4 = por %p1142_p3, %p1141_p1 }
 0x496   : > { %p1144_p10 = pnand %p1143_p4, %p1137_p5 }
 0x540   : > { %v653_v32 = vpop.f32.mrf.mxu0 }
 0x541   : > { %657 = vst.msk [vmem:[%s316_s28] sm:$0xff] %vm320_vm1, %v653_v32 }
 0x542   : > { %v910_v33 = vpop.f32.mrf.mxu0 }
 0x543   : > { %1147 = shalt.err (!%p1144_p10)
}
 0x544   : > { %s1148_s6 = scalar_lea.hbm %s1487_s10, 128  ;;  %s1152_s7 = scalar_lea.hbm %s1536_s5, 256 }
 0x545   : > { %p1149_p0 = scmp.ne.s32.totalorder %s1487_s10, %s1148_s6  ;;  %p1153_p2 = scmp.lt.s32.totalorder %s1487_s10, %s1536_s5 }
 0x546   : > { %p1154_p6 = scmp.lt.s32.totalorder %s1152_s7, %s1148_s6 }
 0x547   : > { %p1150_p8 = pnand %p1149_p0, %p1558_p7 }
 0x548   : > { %p1155_p12 = por %p1154_p6, %p1153_p2 }
 0x549   : > { %p1151_p11 = pneg %p1150_p8 }
 0x54b   : > { %p1156_p9 = pnand %p1155_p12, %p1151_p11 }
 0x54d   : > { %1159 = shalt.err (!%p1156_p9)
}
 0x54e   : > { %924 = dma.vmem_to_hbm [thread:$0]  (%p1558_p7), %s1489_s30, 128, %s1487_s10, %s664_s16  }
 0x54f PF: > { %s702_s11 = sand.u32 1, %s1202_s18   ;;  %p1559_p13 = scmp.ne.s32.totalorder %s1544_s25, 0 }
 0x550   : > { %p1560_p5 = scmp.ge.s32.totalorder %s1214_s21, 2  ;;  %s703_s14 = scalar_lea.sflag [#allocation4], %s702_s11 }
 0x552   : > { %p942_p1 = pnand %p1560_p5, %p1559_p13 }
 0x554   : > { %p943_p3 = pneg %p942_p1 }
 0x556   : > { %1193 = dma.done.wait (%p943_p3), %s703_s14, 128  }
 0x557   : > { %1195 = vsyncadd (%p943_p3), %s703_s14, 4294967168  ;;  %s712_s24 = scalar_lea.sflag [#allocation12], %s702_s11 }
 0x558   : > { %1197 = dma.done.wait (%p943_p3), %s712_s24, 128  }
 0x559   : > { %1199 = vsyncadd (%p943_p3), %s712_s24, 4294967168  ;;  %p26_p7 = scmp.ge.s32.totalorder %s1328_s15, 4   ;;  %s1561_s18 = smov %s1206_s19 }
 0x55a   : > { %s1562_s19 = smov %s1210_s20  ;;  %s1563_s20 = smov %s1344_s27 }
 0x55b   : > { %s1564_s21 = smov %s1328_s15  ;;  %28 = sbr.rel (!%p26_p7) target bundleno = 13 (0xd), region = 119 }
 0x560   :  { %717 = vsyncpa [#allocation3], 1 }
 0x561   :  { %719 = vsyncpa [#allocation3 + $0x1], 1 }
 0x562   :  { %720 = vsyncpa [#allocation6], 1 }
 0x563   :  { %722 = vsyncpa [#allocation6 + $0x1], 1 }
 0x564   :  { %723 = vsyncpa [#allocation9], 1 }
 0x565   :  { %724 = vsyncpa [#allocation4], 1 }
 0x566   :  { %726 = vsyncpa [#allocation4 + $0x1], 1 }
 0x567   :  { %727 = vsyncpa [#allocation12], 1 }
 0x568   :  { %729 = vsyncpa [#allocation12 + $0x1], 1 }

</bundles_post_ra>
